<compile_context>
chip_gen: v6e
topology: v6e:2x2x1
jax: 0.10.0
libtpu: 0.0.40
codegen_flags: <defaults>
</compile_context>

<pallas_src>
import functools

import jax
import jax.numpy as jnp
from jax import lax
from jax.experimental import pallas as pl
from jax.experimental.pallas import tpu as pltpu


def _round_up(n: int, m: int) -> int:
    return ((n + m - 1) // m) * m


def _codebook_index_kernel(x_ref, embed_ref, e2h_ref, idx_ref, *, matmul_dtype):
    """Nearest-codebook index for one row tile. x: [rb, C], embed: [K, C]."""
    x = x_ref[...]
    e = embed_ref[...]

    # x @ embed.T on the MXU (optionally bf16 operands, always f32 accumulation).
    xe = lax.dot_general(
        x.astype(matmul_dtype), e.astype(matmul_dtype),
        (((1,), (1,)), ((), ())),
        preferred_element_type=jnp.float32)             # [rb, K]

    # argmax_k of -(||x||^2 - 2 x.e_k + ||e_k||^2) == argmax_k of (x.e_k - 0.5||e_k||^2):
    # the per-row ||x||^2 is constant across codes (dropped) and the factor 2 is
    # pre-folded into e2h in the wrapper.
    score = xe - e2h_ref[...]                           # [rb, K]

    # First-max argmax (matches torch), kept 2-D end-to-end (no 1-D relayouts):
    k = score.shape[-1]
    row_max = jnp.max(score, axis=-1, keepdims=True)    # [rb, 1]
    col = lax.broadcasted_iota(jnp.int32, score.shape, 1)
    idx = jnp.min(jnp.where(score == row_max, col, jnp.int32(k)),
                  axis=-1, keepdims=True)               # [rb, 1] int32
    idx_ref[...] = idx


def euclidean_codebook_quantize(x, embed, *, row_block=1024, use_bf16_matmul=False):
    """x: [B, T, C], embed: [K, C] -> quantize [B, T, C] (nearest codebook rows)."""
    B, T, C = x.shape
    K, Ce = embed.shape
    assert C == Ce
    N = B * T

    # Row tile: single grid step for small problems; large MXU/HBM-friendly
    # tiles otherwise, shrunk so the [rb, K] f32 score tile stays well inside
    # VMEM on every generation (v7x has only 64 MiB physical).
    if N <= row_block:
        rb = N
    else:
        rb = row_block
        while rb > 128 and rb * _round_up(K, 128) * 4 > (8 << 20):
            rb //= 2
    grid = (pl.cdiv(N, rb),)

    flat = x.reshape(N, C)

    # Hoisted 0.5 * ||embed||^2, computed once in f32, lane-major [1, K].
    e2h = (0.5 * jnp.sum(embed.astype(jnp.float32) ** 2, axis=1)).reshape(1, K)

    matmul_dtype = jnp.bfloat16 if use_bf16_matmul else jnp.float32
    kernel = functools.partial(_codebook_index_kernel, matmul_dtype=matmul_dtype)

    # Explicit VMEM budget (scoped defaults are only 16/32 MiB): double-buffered
    # x & idx tiles, resident (double-buffered) codebook + e2h, score/iota
    # intermediates; 2x headroom, capped at 64 MiB (<= physical on all gens).
    x_item = jnp.dtype(x.dtype).itemsize
    e_item = jnp.dtype(embed.dtype).itemsize
    need = (2 * rb * C * x_item + 2 * rb * 4
            + 2 * K * C * e_item + 2 * _round_up(K, 128) * 4
            + 4 * rb * _round_up(K, 128) * 4)
    vmem_limit = int(min(max(2 * need, 32 << 20), 64 << 20))

    # NOTE: the full [K, C] codebook stays resident in VMEM across the row grid
    # (constant index_map).
    # TODO(synk): for very large K, add an innermost "arbitrary" K grid axis with
    # a running (max, argmax) in VMEM scratch (online argmax) so the codebook
    # streams and the [rb, K] score tile is never fully materialized; on v7x also
    # single-buffer the resident codebook (pl.Buffered(1)) / keep it bf16.
    idx2d = pl.pallas_call(
        kernel,
        out_shape=jax.ShapeDtypeStruct((N, 1), jnp.int32),
        grid_spec=pltpu.PrefetchScalarGridSpec(
            num_scalar_prefetch=0,
            grid=grid,
            in_specs=[
                pl.BlockSpec((rb, C), lambda i: (i, 0)),   # row tile of x
                pl.BlockSpec((K, C), lambda i: (0, 0)),    # resident codebook
                pl.BlockSpec((1, K), lambda i: (0, 0)),    # hoisted 0.5*||embed||^2
            ],
            out_specs=pl.BlockSpec((rb, 1), lambda i: (i, 0)),
        ),
        compiler_params=pltpu.CompilerParams(
            dimension_semantics=("parallel",),             # row axis shards across TCs
            vmem_limit_bytes=vmem_limit),
    )(flat, embed, e2h)

    # Embedding lookup in the wrapper: cheap HBM-side gather, exact, and output
    # dtype follows embed (matching torch F.embedding semantics).
    return jnp.take(embed, idx2d[:, 0], axis=0).reshape(B, T, C)


if __name__ == "__main__":
    # Module config (small): dim=32, codebook_size=64, kmeans_init=False -> randn init
    dim = 32
    codebook_size = 64
    B, T = 2, 8

    key = jax.random.PRNGKey(0)
    k_embed, k_x = jax.random.split(key)
    embed = jax.random.normal(k_embed, (codebook_size, dim), dtype=jnp.float32)
    x = jax.random.normal(k_x, (B, T, dim), dtype=jnp.float32)

    quantize = euclidean_codebook_quantize(x, embed)
    quantize = jax.block_until_ready(quantize)

    # sanity check against a plain-JAX reference of the original torch math
    flat = x.reshape(B * T, dim)
    dist = -(jnp.sum(flat ** 2, 1, keepdims=True) - 2.0 * flat @ embed.T
             + jnp.sum(embed ** 2, 1)[None, :])
    ref = embed[jnp.argmax(dist, axis=-1)].reshape(B, T, dim)
    assert jnp.allclose(quantize, ref, atol=1e-5), "mismatch vs reference"

    print("KERNEL_OK")
</pallas_src>

<mosaic_0001>
module attributes {stable_mosaic.version = 11 : i64} {
  func.func @_codebook_index_kernel(%arg0: i32, %arg1: memref<16x32xf32, #tpu.memory_space<vmem>>, %arg2: memref<64x32xf32, #tpu.memory_space<vmem>>, %arg3: memref<1x64xf32, #tpu.memory_space<vmem>>, %arg4: memref<16x1xi32, #tpu.memory_space<vmem>>) attributes {dimension_semantics = [#tpu.dimension_semantics<parallel>], iteration_bounds = array<i64: 1>, scalar_prefetch = 0 : i64, scratch_operands = 0 : i64, tpu.core_type = #tpu.core_type<tc>, window_params = [{transform_indices = @transform_0, window_bounds = array<i64: 16, 32>}, {pipeline_mode = #tpu.pipeline_mode<synchronous>, transform_indices = @transform_1, window_bounds = array<i64: 64, 32>}, {pipeline_mode = #tpu.pipeline_mode<synchronous>, transform_indices = @transform_2, window_bounds = array<i64: 1, 64>}, {transform_indices = @transform_3, window_bounds = array<i64: 16, 1>}]} {
    %c0 = arith.constant 0 : index
    %c0_0 = arith.constant 0 : index
    %0 = vector.load %arg1[%c0, %c0_0] : memref<16x32xf32, #tpu.memory_space<vmem>>, vector<16x32xf32>
    %c0_1 = arith.constant 0 : index
    %c0_2 = arith.constant 0 : index
    %1 = vector.load %arg2[%c0_1, %c0_2] : memref<64x32xf32, #tpu.memory_space<vmem>>, vector<64x32xf32>
    %cst = arith.constant dense<0.000000e+00> : vector<16x64xf32>
    %2 = tpu.matmul %0, %1, %cst {dimension_numbers = #tpu.dot_dimension_numbers<[1], [1], [0], [0], [0, 0, 1, 0], [], []>} : vector<16x32xf32>, vector<64x32xf32>, vector<16x64xf32> -> vector<16x64xf32>
    %c0_3 = arith.constant 0 : index
    %c0_4 = arith.constant 0 : index
    %3 = vector.load %arg3[%c0_3, %c0_4] : memref<1x64xf32, #tpu.memory_space<vmem>>, vector<1x64xf32>
    %4 = vector.broadcast %3 : vector<1x64xf32> to vector<16x64xf32>
    %5 = arith.subf %2, %4 : vector<16x64xf32>
    %cst_5 = arith.constant dense<0xFF800000> : vector<16xf32>
    %6 = vector.multi_reduction <maximumf>, %5, %cst_5 [1] : vector<16x64xf32> to vector<16xf32>
    %7 = vector.shape_cast %6 : vector<16xf32> to vector<16x1xf32>
    %8 = tpu.iota {dimensions = array<i32: 1>} : vector<16x64xi32>
    %9 = vector.broadcast %7 : vector<16x1xf32> to vector<16x64xf32>
    %10 = arith.cmpf oeq, %5, %9 : vector<16x64xf32>
    %c64_i32 = arith.constant 64 : i32
    %11 = vector.broadcast %c64_i32 : i32 to vector<16x64xi32>
    %12 = arith.select %10, %8, %11 : vector<16x64xi1>, vector<16x64xi32>
    %cst_6 = arith.constant dense<2147483647> : vector<16xi32>
    %13 = vector.multi_reduction <minsi>, %12, %cst_6 [1] : vector<16x64xi32> to vector<16xi32>
    %14 = vector.shape_cast %13 : vector<16xi32> to vector<16x1xi32>
    %c0_7 = arith.constant 0 : index
    %c0_8 = arith.constant 0 : index
    %15 = vector.load %arg4[%c0_7, %c0_8] : memref<16x1xi32, #tpu.memory_space<vmem>>, vector<16x1xi32>
    tpu.vector_store %arg4[%c0_7, %c0_8], %14 {strides = array<i32>} : memref<16x1xi32, #tpu.memory_space<vmem>>, vector<16x1xi32>,
    return
  }
  func.func @transform_0(%arg0: i32) -> (i32, i32) {
    %c0_i32 = arith.constant 0 : i32
    %c0_i32_0 = arith.constant 0 : i32
    return %arg0, %c0_i32 : i32, i32
  }
  func.func @transform_1(%arg0: i32) -> (i32, i32) {
    %c0_i32 = arith.constant 0 : i32
    %c0_i32_0 = arith.constant 0 : i32
    %c0_i32_1 = arith.constant 0 : i32
    return %c0_i32, %c0_i32_0 : i32, i32
  }
  func.func @transform_2(%arg0: i32) -> (i32, i32) {
    %c0_i32 = arith.constant 0 : i32
    %c0_i32_0 = arith.constant 0 : i32
    %c0_i32_1 = arith.constant 0 : i32
    return %c0_i32, %c0_i32_0 : i32, i32
  }
  func.func @transform_3(%arg0: i32) -> (i32, i32) {
    %c0_i32 = arith.constant 0 : i32
    %c0_i32_0 = arith.constant 0 : i32
    return %arg0, %c0_i32 : i32, i32
  }
}

</mosaic_0001>

<bundles_post_ra>
// kernel: tpu_custom_call.1
= control target key start
LH: loop header
LB: loop body
LE: loop exit
PB: predicated region body
PF: predicated region fallthrough
CT: control target
= control target key end

     0   :  { %vm24_vm0 = vcmask 261120   ;;  %vm139_vm1 = vcmask 523264   ;;  %v146_v17 = vlaneseq  ;;  %vm182_vm6 = vcmask 7168   ;;  %s310_s1 = inlined_call_operand.vmem [shape: f32[64,32], index: 1, kind: input, shape index: {}]   ;;  %s311_s0 = inlined_call_operand.vmem [shape: f32[16,32], index: 0, kind: input, shape index: {}]   ;;  %s312_s2 = inlined_call_operand.vmem [shape: f32[1,64], index: 2, kind: input, shape index: {}]   ;;  %s313_s3 = inlined_call_operand.vmem [shape: s32[16,1], index: 3, kind: output, shape index: {}]  }
   0x1   :  { %v23_v0 = vld [vmem:[%s310_s1 + $0x38] sm:$0xff]  ;;  %v22_v1 = vld [vmem:[%s310_s1 + $0x30] sm:$0xff]  ;;  %v14_v2 = vld [vmem:[%s311_s0] sm:$0xff] }
   0x2   :  { %210 = vmatprep.subr.msk.mxu0 %vm24_vm0, %v23_v0  ;;  %226 = vmatprep.mubr.msk.f32.mxu0 %vm24_vm0, %v14_v2  ;;  %v21_v3 = vld [vmem:[%s310_s1 + $0x28] sm:$0xff]  ;;  %v20_v4 = vld [vmem:[%s310_s1 + $0x20] sm:$0xff]  ;;  %v19_v5 = vld [vmem:[%s310_s1 + $0x18] sm:$0xff]  ;;  %v147_v18 = vand.u32 127, %v146_v17 }
   0x3   :  { %211 = vmatpush3.xpose.msk.msra.mxu0 %vm24_vm0, %v23_v0  ;;  %v18_v6 = vld [vmem:[%s310_s1 + $0x10] sm:$0xff]  ;;  %v17_v7 = vld [vmem:[%s310_s1 + $0x8] sm:$0xff]  ;;  %v16_v8 = vld [vmem:[%s310_s1] sm:$0xff] }
   0x4   :  { %212 = vmatprep.subr.msk.mxu0 %vm24_vm0, %v22_v1  ;;  %v15_v9 = vld [vmem:[%s311_s0 + $0x8] sm:$0xff]  ;;  %v199_v11 = vld [vmem:[%s312_s2] ss:$0 sm:$0xff] }
   0x7   :  { %213 = vmatpush3.xpose.msk.msra.mxu0 %vm24_vm0, %v22_v1 }
   0x8   :  { %214 = vmatprep.subr.msk.mxu0 %vm24_vm0, %v21_v3 }
   0xb   :  { %215 = vmatpush3.xpose.msk.msra.mxu0 %vm24_vm0, %v21_v3 }
   0xc   :  { %216 = vmatprep.subr.msk.mxu0 %vm24_vm0, %v20_v4 }
   0xf   :  { %217 = vmatpush3.xpose.msk.msra.mxu0 %vm24_vm0, %v20_v4 }
  0x10   :  { %218 = vmatprep.subr.msk.mxu0 %vm24_vm0, %v19_v5 }
  0x13   :  { %219 = vmatpush3.xpose.msk.msra.mxu0 %vm24_vm0, %v19_v5 }
  0x14   :  { %220 = vmatprep.subr.msk.mxu0 %vm24_vm0, %v18_v6 }
  0x17   :  { %221 = vmatpush3.xpose.msk.msra.mxu0 %vm24_vm0, %v18_v6 }
  0x18   :  { %222 = vmatprep.subr.msk.mxu0 %vm24_vm0, %v17_v7 }
  0x1b   :  { %223 = vmatpush3.xpose.msk.msra.mxu0 %vm24_vm0, %v17_v7 }
  0x1c   :  { %224 = vmatprep.subr.msk.mxu0 %vm24_vm0, %v16_v8 }
  0x1f   :  { %225 = vmatpush3.xpose.msk.msra.mxu0 %vm24_vm0, %v16_v8 }
  0x22   :  { %227 = vmatmul.mubr.msk.f32.vlgmr.msra.gmra.mxu0 %vm24_vm0, %v15_v9 }
  0xe2   :  { %v228_v10 = vpop.f32.mrf.mxu0 }
  0xe3   :  { %v138_v14 = vsub.f32 %v228_v10, %v199_v11 }
  0xe4   :  { %v121_v12 = vpop.f32.mrf.mxu0 }
  0xe5   :  { %v137_v13 = vsub.f32 %v121_v12, %v199_v11  ;;  %v143_v16 = vsel %vm139_vm1, %v138_v14, -inf }
  0xe7   :  { %v140_v15 = vsel %vm139_vm1, %v137_v13, -inf }
  0xe8   :  { %141 = vmax.xlane.f32.xlu0 %v140_v15 }
  0xec   :  { %144 = vmax.xlane.f32.xlu0 %v143_v16 }
 0x171   :  { %v142_v19 = vpop.xlane.xlu0 %141 }
 0x172   :  { %vm148_vm2 = vcmp.eq.f32.partialorder %v137_v13, %v142_v19 }
 0x173   :  { %v150_v20 = vsel %vm148_vm2, %v147_v18, 64 }
 0x174   :  { %v152_v21 = vsel %vm139_vm1, %v150_v20, 2147483647 }
 0x175   :  { %v145_v22 = vpop.xlane.xlu0 %144  ;;  %v154_v23 = vshra.s32 %v152_v21, 16  ;;  %v153_v29 = vand.u32 65535, %v152_v21 }
 0x176   :  { %vm149_vm3 = vcmp.eq.f32.partialorder %v138_v14, %v145_v22 }
 0x177   :  { %v151_v24 = vsel %vm149_vm3, %v147_v18, 64  ;;  %v156_v25 = vcvt.s32.f32 %v154_v23  ;;  %v155_v31 = vcvt.s32.f32 %v153_v29 }
 0x178   :  { %v167_v26 = vsel %vm139_vm1, %v151_v24, 2147483647 }
 0x179   :  { %157 = vmin.xlane.f32.xlu1 %v156_v25  ;;  %v169_v27 = vshra.s32 %v167_v26, 16  ;;  %v168_v32 = vand.u32 65535, %v167_v26 }
 0x17b   :  { %v171_v28 = vcvt.s32.f32 %v169_v27  ;;  %v170_v35 = vcvt.s32.f32 %v168_v32 }
 0x17d   :  { %172 = vmin.xlane.f32.xlu1 %v171_v28 }
 0x202   :  { %v158_v30 = vpop.xlane.xlu1 %157 }
 0x203   :  { %vm159_vm4 = vcmp.eq.f32.partialorder %v156_v25, %v158_v30  ;;  %v164_v37 = vcvt.f32.s32 %v158_v30 }
 0x204   :  { %v160_v33 = vsel %vm159_vm4, %v155_v31, inf }
 0x205   :  { %161 = vmin.xlane.f32.xlu0 %v160_v33  ;;  %v165_v39 = vshll.u32 %v164_v37, 16 }
 0x206   :  { %v173_v34 = vpop.xlane.xlu1 %172 }
 0x207   :  { %vm174_vm5 = vcmp.eq.f32.partialorder %v171_v28, %v173_v34  ;;  %v179_v40 = vcvt.f32.s32 %v173_v34 }
 0x208   :  { %v175_v36 = vsel %vm174_vm5, %v170_v35, inf }
 0x209   :  { %176 = vmin.xlane.f32.xlu1 %v175_v36  ;;  %v180_v44 = vshll.u32 %v179_v40, 16 }
 0x28e   :  { %v162_v38 = vpop.xlane.xlu0 %161 }
 0x28f   :  { %v163_v41 = vcvt.f32.s32 %v162_v38 }
 0x291   :  { %v166_v42 = vadd.s32 %v165_v39, %v163_v41 }
 0x292   :  { %v177_v43 = vpop.xlane.xlu1 %176 }
 0x293   :  { %183 = vst.msk [vmem:[%s313_s3] sm:$0xff] %vm182_vm6, %v166_v42  ;;  %v178_v45 = vcvt.f32.s32 %v177_v43 }
 0x295   :  { %v181_v46 = vadd.s32 %v180_v44, %v178_v45 }
 0x297   :  { %184 = vst.msk [vmem:[%s313_s3 + $0x8] sm:$0xff] %vm182_vm6, %v181_v46 }

</bundles_post_ra>
